<compile_context>
chip_gen: v6e
topology: v6e:2x2x1
jax: 0.10.0
libtpu: 0.0.40
codegen_flags: <defaults>
</compile_context>

<pallas_src>
import numpy as np
import jax
import jax.numpy as jnp
from jax.experimental import pallas as pl
from jax.experimental.pallas import tpu as pltpu

N_MODELS = 6


def _round_up(x, m):
    return -(-x // m) * m


def _multcov_kernel(x_ref, w_ref, b_ref, o_ref, acc_ref):
    """Folded MultCovNet forward: o = sum_k (x * w) + b, K-tiled.

    grid = (batch tiles [parallel], K tiles [arbitrary / reduction])

    x_ref  : [TM, TK] bf16  flattened-image tile (batch on sublanes, D on lanes)
    w_ref  : [1, TK]  bf16  folded-weight tile (broadcast over batch)
    b_ref  : [1, 1]   f32   folded bias (SMEM scalar)
    o_ref  : [TM, 1]  f32   output column (resident across the K axis)
    acc_ref: [TM, 1]  f32   VMEM accumulator scratch
    """
    k = pl.program_id(1)

    @pl.when(k == 0)
    def _():
        acc_ref[...] = jnp.zeros_like(acc_ref)

    # bf16 storage / DMA, f32 compute (v5e has no bf16 VPU path).
    x = x_ref[...].astype(jnp.float32)
    w = w_ref[...].astype(jnp.float32)
    acc_ref[...] += jnp.sum(x * w, axis=-1, keepdims=True)

    @pl.when(k == pl.num_programs(1) - 1)
    def _():
        o_ref[...] = acc_ref[...] + b_ref[0, 0]


def init_params(key, d_in, n_models=N_MODELS):
    """Synthetic backbone/classifier params + exact offline fold."""
    k1, k2, k3, k4 = jax.random.split(key, 4)
    w6 = jax.random.normal(k1, (d_in, n_models), jnp.float32) / np.sqrt(d_in)
    b6 = jax.random.normal(k2, (1, n_models), jnp.float32) * 0.01
    wc = jax.random.normal(k3, (n_models, 1), jnp.float32) / np.sqrt(n_models)
    bc = jax.random.normal(k4, (1, 1), jnp.float32) * 0.01

    # Fold "6 backbones + concat + Linear(6,1)" into a single affine map.
    # Exact: both stages are affine with no activation in between.
    w_fused = (w6 @ wc).reshape(1, d_in).astype(jnp.bfloat16)   # [1, D]
    b_fused = (b6 @ wc + bc).astype(jnp.float32)                # [1, 1]
    return (w_fused, b_fused), (w6, b6, wc, bc)


def multcovnet_forward(x, params, *, tk=512, tm_max=256):
    """x: [B, C, H, W] float32  ->  [B, 1] float32."""
    w_fused, b_fused = params
    B = x.shape[0]
    D = int(np.prod(x.shape[1:]))

    # bf16 storage halves the dominant x/w HBM traffic; compute stays f32.
    x_flat = x.reshape(B, D).astype(jnp.bfloat16)

    # Pad batch to a sublane-friendly multiple of 16 (bf16 packing) and pick
    # the batch tile; pad the contraction dim to a multiple of the K tile.
    # Zero padding is exact (zero rows are sliced off, zero cols contribute 0).
    b_pad = _round_up(B, 16)
    tm = min(b_pad, tm_max)
    b_pad = _round_up(b_pad, tm)
    d_pad = _round_up(D, tk)

    x_p = jnp.zeros((b_pad, d_pad), jnp.bfloat16).at[:B, :D].set(x_flat)
    w_p = jnp.zeros((1, d_pad), jnp.bfloat16).at[:, :D].set(w_fused)

    grid = (b_pad // tm, d_pad // tk)

    out_padded = pl.pallas_call(
        _multcov_kernel,
        out_shape=jax.ShapeDtypeStruct((b_pad, 1), jnp.float32),
        grid_spec=pltpu.PrefetchScalarGridSpec(
            num_scalar_prefetch=0,
            grid=grid,
            in_specs=[
                pl.BlockSpec((tm, tk), lambda i, k: (i, k)),           # x tile
                pl.BlockSpec((1, tk), lambda i, k: (0, k)),            # weight
                pl.BlockSpec(memory_space=pltpu.MemorySpace.SMEM),     # bias
            ],
            out_specs=pl.BlockSpec((tm, 1), lambda i, k: (i, 0)),
            scratch_shapes=[pltpu.VMEM((tm, 1), jnp.float32)],
        ),
        compiler_params=pltpu.CompilerParams(
            # Batch tiles shard across TensorCores (v7x megacore); the K axis
            # is a reduction with a resident output -> "arbitrary".
            dimension_semantics=("parallel", "arbitrary"),
            vmem_limit_bytes=32 * 1024 * 1024,
        ),
    )(x_p, w_p, b_fused)

    return out_padded[:B, :]


def multcovnet_reference(x, raw_params):
    """Pure-JAX f32 reference of the original (unfolded) two-stage forward."""
    w6, b6, wc, bc = raw_params
    x_flat = x.reshape(x.shape[0], -1).astype(jnp.float32)
    feats = x_flat @ w6 + b6          # concat of the 6 backbone outputs -> [B, 6]
    return feats @ wc + bc            # classifier Linear(6, 1) -> [B, 1]


if __name__ == "__main__":
    key = jax.random.PRNGKey(0)
    k_x, k_p = jax.random.split(key)

    B, C, H, W = 2, 4, 16, 16
    x = jax.random.normal(k_x, (B, C, H, W), jnp.float32)

    params, raw_params = init_params(k_p, C * H * W)

    y = multcovnet_forward(x, params)
    y = jax.block_until_ready(y)
    assert y.shape == (B, 1), y.shape

    # Tight check: f64 reference built from the SAME bf16-stored operands the
    # kernel consumes (verifies the kernel computation itself).
    w_fused, b_fused = params
    xb = np.asarray(x.reshape(B, -1).astype(jnp.bfloat16).astype(jnp.float32),
                    np.float64)
    wb = np.asarray(w_fused.astype(jnp.float32), np.float64).reshape(-1, 1)
    y_exact = xb @ wb + np.asarray(b_fused, np.float64)
    np.testing.assert_allclose(np.asarray(y), y_exact, rtol=1e-4, atol=1e-4)

    # Loose check: original unfolded f32 two-layer semantics (only difference
    # is bf16 storage rounding of x and the folded weight).
    y_ref = np.asarray(multcovnet_reference(x, raw_params))
    np.testing.assert_allclose(np.asarray(y), y_ref, rtol=5e-2, atol=5e-2)

    print("KERNEL_OK")
</pallas_src>

<mosaic_0001>
module attributes {stable_mosaic.version = 11 : i64} {
  func.func @_multcov_kernel(%arg0: i32, %arg1: i32, %arg2: memref<16x512xbf16, #tpu.memory_space<vmem>>, %arg3: memref<1x512xbf16, #tpu.memory_space<vmem>>, %arg4: memref<1x1xf32, #tpu.memory_space<smem>>, %arg5: memref<16x1xf32, #tpu.memory_space<vmem>>, %arg6: memref<16x1xf32, #tpu.memory_space<vmem>>) attributes {dimension_semantics = [#tpu.dimension_semantics<parallel>, #tpu.dimension_semantics<arbitrary>], iteration_bounds = array<i64: 1, 2>, scalar_prefetch = 0 : i64, scratch_operands = 1 : i64, tpu.core_type = #tpu.core_type<tc>, window_params = [{transform_indices = @transform_0, window_bounds = array<i64: 16, 512>}, {transform_indices = @transform_1, window_bounds = array<i64: 1, 512>}, {transform_indices = @transform_2, window_bounds = array<i64: 1, 1>}, {transform_indices = @transform_3, window_bounds = array<i64: 16, 1>}]} {
    %c0_i32 = arith.constant 0 : i32
    %0 = arith.cmpi eq, %arg1, %c0_i32 : i32
    %1 = arith.extui %0 : i1 to i32
    %c0_i32_0 = arith.constant 0 : i32
    %2 = arith.cmpi ne, %1, %c0_i32_0 : i32
    scf.if %2 {
      %cst_9 = arith.constant 0.000000e+00 : f32
      %17 = vector.broadcast %cst_9 : f32 to vector<16x1xf32>
      %c0_10 = arith.constant 0 : index
      %c0_11 = arith.constant 0 : index
      %18 = vector.load %arg6[%c0_10, %c0_11] : memref<16x1xf32, #tpu.memory_space<vmem>>, vector<16x1xf32>
      tpu.vector_store %arg6[%c0_10, %c0_11], %17 {strides = array<i32>} : memref<16x1xf32, #tpu.memory_space<vmem>>, vector<16x1xf32>,
    } else {
    }
    %c0 = arith.constant 0 : index
    %c0_1 = arith.constant 0 : index
    %3 = vector.load %arg2[%c0, %c0_1] : memref<16x512xbf16, #tpu.memory_space<vmem>>, vector<16x512xbf16>
    %4 = arith.extf %3 : vector<16x512xbf16> to vector<16x512xf32>
    %c0_2 = arith.constant 0 : index
    %c0_3 = arith.constant 0 : index
    %5 = vector.load %arg3[%c0_2, %c0_3] : memref<1x512xbf16, #tpu.memory_space<vmem>>, vector<1x512xbf16>
    %6 = arith.extf %5 : vector<1x512xbf16> to vector<1x512xf32>
    %c0_4 = arith.constant 0 : index
    %c0_5 = arith.constant 0 : index
    %7 = vector.load %arg6[%c0_4, %c0_5] : memref<16x1xf32, #tpu.memory_space<vmem>>, vector<16x1xf32>
    %8 = vector.broadcast %6 : vector<1x512xf32> to vector<16x512xf32>
    %9 = arith.mulf %4, %8 : vector<16x512xf32>
    %cst = arith.constant dense<0.000000e+00> : vector<16xf32>
    %10 = vector.multi_reduction <add>, %9, %cst [1] : vector<16x512xf32> to vector<16xf32>
    %11 = vector.shape_cast %10 : vector<16xf32> to vector<16x1xf32>
    %12 = arith.addf %7, %11 : vector<16x1xf32>
    %c0_6 = arith.constant 0 : index
    %c0_7 = arith.constant 0 : index
    %13 = vector.load %arg6[%c0_6, %c0_7] : memref<16x1xf32, #tpu.memory_space<vmem>>, vector<16x1xf32>
    tpu.vector_store %arg6[%c0_6, %c0_7], %12 {strides = array<i32>} : memref<16x1xf32, #tpu.memory_space<vmem>>, vector<16x1xf32>,
    %c1_i32 = arith.constant 1 : i32
    %14 = arith.cmpi eq, %arg1, %c1_i32 : i32
    %15 = arith.extui %14 : i1 to i32
    %c0_i32_8 = arith.constant 0 : i32
    %16 = arith.cmpi ne, %15, %c0_i32_8 : i32
    scf.if %16 {
      %c0_9 = arith.constant 0 : index
      %c0_10 = arith.constant 0 : index
      %17 = vector.load %arg6[%c0_9, %c0_10] : memref<16x1xf32, #tpu.memory_space<vmem>>, vector<16x1xf32>
      %c0_11 = arith.constant 0 : index
      %c0_12 = arith.constant 0 : index
      %18 = memref.load %arg4[%c0_11, %c0_12] : memref<1x1xf32, #tpu.memory_space<smem>>
      %19 = vector.broadcast %18 : f32 to vector<16x1xf32>
      %20 = arith.addf %17, %19 : vector<16x1xf32>
      %c0_13 = arith.constant 0 : index
      %c0_14 = arith.constant 0 : index
      %21 = vector.load %arg5[%c0_13, %c0_14] : memref<16x1xf32, #tpu.memory_space<vmem>>, vector<16x1xf32>
      tpu.vector_store %arg5[%c0_13, %c0_14], %20 {strides = array<i32>} : memref<16x1xf32, #tpu.memory_space<vmem>>, vector<16x1xf32>,
    } else {
    }
    return
  }
  func.func @transform_0(%arg0: i32, %arg1: i32) -> (i32, i32) {
    %c0_i32 = arith.constant 0 : i32
    return %arg0, %arg1 : i32, i32
  }
  func.func @transform_1(%arg0: i32, %arg1: i32) -> (i32, i32) {
    %c0_i32 = arith.constant 0 : i32
    %c0_i32_0 = arith.constant 0 : i32
    return %c0_i32, %arg1 : i32, i32
  }
  func.func @transform_2(%arg0: i32, %arg1: i32) -> (i32, i32) {
    %c0_i32 = arith.constant 0 : i32
    %c0_i32_0 = arith.constant 0 : i32
    %c0_i32_1 = arith.constant 0 : i32
    return %c0_i32, %c0_i32_0 : i32, i32
  }
  func.func @transform_3(%arg0: i32, %arg1: i32) -> (i32, i32) {
    %c0_i32 = arith.constant 0 : i32
    %c0_i32_0 = arith.constant 0 : i32
    return %arg0, %c0_i32 : i32, i32
  }
}

</mosaic_0001>

<bundles_post_ra>
// kernel: tpu_custom_call.1
= control target key start
LH: loop header
LB: loop body
LE: loop exit
PB: predicated region body
PF: predicated region fallthrough
CT: control target
= control target key end

     0   :  { %s803_s0 = inlined_call_operand.hbm [shape: bf16[16,1024], index: 0, kind: input, shape index: {}]   ;;  %s804_s1 = inlined_call_operand.hbm [shape: bf16[1,1024], index: 1, kind: input, shape index: {}]   ;;  %s805_s2 = inlined_call_operand.<no memory space> [shape: f32[1,1], index: 2, kind: input, shape index: {}]   ;;  %s806_s3 = inlined_call_operand.vmem [shape: f32[16,1], index: 3, kind: output, shape index: {}]  }
   0x1   :  { %8 = sst [smem:[#allocation3]] %s805_s2 }
   0x2   :  { %9 = vsyncpa [#allocation5], 0 }
   0x3   :  { %11 = vsyncpa [#allocation5 + $0x1], 0 }
   0x4   :  { %12 = vsyncpa [#allocation7], 0 }
   0x5   :  { %14 = vsyncpa [#allocation7 + $0x1], 0  ;;  %s670_s14 = smov 0   ;;  %s672_s15 = smov 0  }
   0x6   :  { %s674_s16 = smov 0   ;;  %s676_s17 = smov 0  }
   0x7   :  { %s678_s18 = smov 0   ;;  %s680_s19 = smov 0  }
   0x8 LB: > { %s445_s2 = sadd.s32 4294967295, %s639_s19   ;;  %s29_s20 = sadd.s32 1, %s635_s18  ;;  %s639_s19 = sphi %s680_s19, %s20_s19   ;;  %s635_s18 = sphi %s678_s18, %s815_s18   ;;  %s631_s17 = sphi %s676_s17, %s814_s17   ;;  %s627_s16 = sphi %s674_s16, %s813_s16   ;;  %s623_s15 = sphi %s672_s15, %s812_s15   ;;  %s619_s14 = sphi %s670_s14, %s811_s14  }
   0x9   : > { %p30_p0 = scmp.ge.s32.totalorder %s29_s20, 2  ;;  %s41_s21 = sadd.s32 1, %s627_s16 }
   0xa   : > { %p48_p1 = scmp.ne.s32.totalorder %s627_s16, %s623_s15  ;;  %p49_p2 = scmp.eq.s32.totalorder %s639_s19, 0 }
   0xb   : > { %s817_s20 = smov (%p30_p0, %s29_s20), 0  ;;  %p54_p4 = scmp.ne.s32.totalorder %s623_s15, %s619_s14 }
   0xc   : > { %p706_p3 = por %p49_p2, %p48_p1  ;;  %s37_s23 = ssub.s32 %s635_s18, %s817_s20 }
   0xd   : > { %p55_p5 = scmp.eq.s32.totalorder %s445_s2, 0  ;;  %p39_p6 = scmp.eq.s32.totalorder %s37_s23, 0 }
   0xe   : > { %p476_p8 = scmp.lt.s32.totalorder %s639_s19, 2  ;;  %s722_s26 = sand.u32 1, %s627_s16  }
   0xf   : > { %p713_p7 = por %p55_p5, %p54_p4  ;;  %s463_s27 = sshll.u32 %s635_s18, 8 }
  0x10   : > { %s719_s25 = scalar_select %p39_p6, %s627_s16, %s41_s21  }
  0x11   : > { %s448_s28 = sshll.u32 %s722_s26, 5  ;;  %s167_s4 = scalar_lea.hbm %s803_s0, %s463_s27 }
  0x12   : > { %s158_s5 = scalar_lea.vmem [#allocation4], %s448_s28  ;;  %p731_p9 = pnand %p476_p8, %p706_p3 }
  0x13   : > { %s168_s6 = sshll.u32 %s158_s5, 4  ;;  %p454_p10 = scmp.ge.s32.totalorder %s639_s19, 1  ;;  %s169_s6 = int_to_ptr.vmem [resolvable:$true] %s168_s6 }
  0x14   : > { %s155_s8 = scalar_lea.sflag [#allocation5], %s722_s26  ;;  %p531_p11 = pneg %p731_p9 }
  0x15   : > { %s542_s9 = scalar_lea.vmem %s169_s6, 512  ;;  %s641_s10 = smov [#allocation4]  }
  0x16   : > { %p543_p12 = scmp.ne.s32.totalorder %s169_s6, %s542_s9  ;;  %s547_s11 = sshll.u32 %s641_s10, 4  ;;  %s548_s11 = int_to_ptr.vmem [resolvable:$false] %s547_s11 }
  0x17   : > { %s549_s12 = scalar_lea.vmem %s548_s11, 1024  ;;  %p550_p1 = scmp.lt.s32.totalorder %s169_s6, %s548_s11 }
  0x18   : > { %p545_p13 = pnand %p543_p12, %p531_p11  ;;  %p551_p2 = scmp.lt.s32.totalorder %s549_s12, %s542_s9 }
  0x1a   : > { %p546_p0 = pneg %p545_p13  ;;  %p552_p3 = por %p551_p2, %p550_p1 }
  0x1c   : > { %p553_p4 = pnand %p552_p3, %p546_p0 }
  0x1e   : > { %556 = shalt.err (!%p553_p4)
}
  0x1f   : > { %s642_s13 = smov 512   ;;  %s643_s14 = smov 256  }
  0x20   : > { %s644_s2 = smov 16   ;;  %p195_p5 = scmp.lt.s32.totalorder %s639_s19, 3 }
  0x21   : > { %472 = dma.hbm_to_vmem [thread:$0]  (!%p731_p9), %s167_s4, 512, %s169_s6, %s155_s8, %s642_s13, %s643_s14, %s644_s2  }
  0x22   : > { %s451_s21 = sshll.u32 %s722_s26, 2  ;;  %s464_s22 = sshll.u32 %s635_s18, 6 }
  0x23   : > { %p749_p6 = pnand %p454_p10, %p195_p5  ;;  %s188_s29 = scalar_lea.hbm %s804_s1, %s464_s22 }
  0x24   : > { %s182_s30 = scalar_lea.vmem [#allocation6], %s451_s21  ;;  %s179_s9 = scalar_lea.sflag [#allocation7], %s722_s26 }
  0x25   : > { %s190_s5 = sshll.u32 %s182_s30, 4  ;;  %s645_s4 = smov [#allocation6]   ;;  %s191_s5 = int_to_ptr.vmem [resolvable:$true] %s190_s5 }
  0x26   : > { %s570_s10 = scalar_lea.vmem %s191_s5, 64  ;;  %s575_s6 = sshll.u32 %s645_s4, 4  ;;  %s576_s6 = int_to_ptr.vmem [resolvable:$false] %s575_s6 }
  0x27   : > { %p571_p8 = scmp.ne.s32.totalorder %s191_s5, %s570_s10  ;;  %s577_s8 = scalar_lea.vmem %s576_s6, 128 }
  0x28   : > { %p578_p10 = scmp.lt.s32.totalorder %s191_s5, %s576_s6  ;;  %p579_p0 = scmp.lt.s32.totalorder %s577_s8, %s570_s10 }
  0x29   : > { %p573_p12 = pnand %p571_p8, %p531_p11 }
  0x2a   : > { %p580_p1 = por %p579_p0, %p578_p10 }
  0x2b   : > { %p574_p13 = pneg %p573_p12 }
  0x2d   : > { %p581_p2 = pnand %p580_p1, %p574_p13 }
  0x2f   : > { %584 = shalt.err (!%p581_p2)
}
  0x30   : > { %475 = dma.hbm_to_vmem [thread:$0]  (!%p731_p9), %s188_s29, 64, %s191_s5, %s179_s9  }
  0x31   : > { %199 = sbr.rel (%p749_p6) target bundleno = 240 (0xf0), region = 32  ;;  %s201_s26 = sand.u32 (!%p749_p6), 1, %s623_s15  }
  0x32   : > { %s455_s11 = sshll.u32 (!%p749_p6), %s201_s26, 5  ;;  %s202_s12 = scalar_lea.sflag (!%p749_p6), [#allocation5], %s201_s26 }
  0x33   : > { %s205_s13 = scalar_lea.vmem (!%p749_p6), [#allocation4], %s455_s11 }
  0x36   : > { %610 = dma.done.wait (%p713_p7), %s202_s12, 512  }
  0x37   : > { %612 = vsyncadd (%p713_p7), %s202_s12, 4294966784  ;;  %s456_s14 = sshll.u32 %s201_s26, 2  ;;  %s211_s2 = scalar_lea.sflag [#allocation7], %s201_s26 }
  0x38   : > { %s214_s21 = scalar_lea.vmem [#allocation6], %s456_s14 }
  0x39   : > { %614 = dma.done.wait (%p713_p7), %s211_s2, 64  }
  0x3a   : > { %616 = vsyncadd (%p713_p7), %s211_s2, 4294967232  ;;  %p457_p9 = scmp.ne.s32.totalorder %s631_s17, 0 }
  0x3c   : > { %254 = sbr.rel (%p457_p9) target bundleno = 67 (0x43), region = 44 }
  0x41   : > { %vm255_vm0 = vcmask 7168   ;;  %v646_v0 = vmov 0.0  }
  0x42   : > { %256 = vst.msk [vmem:[#allocation2] sm:$0xff] %vm255_vm0, %v646_v0  ;;  %257 = vst.msk [vmem:[#allocation2 + $0x8] sm:$0xff] %vm255_vm0, %v646_v0 }
  0x43 PF: > { %v270_v1 = vld [vmem:[%s214_s21] sm:$0xf]  ;;  %v275_v2 = vlaneseq  ;;  %v259_v4 = vld [vmem:[%s205_s13 + $0x8] sm:$0xff]  ;;  %v260_v11 = vld [vmem:[%s205_s13 + $0x10] sm:$0xff]  ;;  %vm331_vm1 = vcmask 7168   ;;  %p458_p7 = scmp.ne.s32.totalorder %s631_s17, 1 }
  0x44   : > { %v258_v3 = vld [vmem:[%s205_s13] sm:$0xff]  ;;  %v271_v5 = vunpack.c.l.bf16 %v270_v1  ;;  %v261_v12 = vld [vmem:[%s205_s13 + $0x18] sm:$0xff]  ;;  %v264_v15 = vunpack.c.l.bf16 %v259_v4  ;;  %v265_v20 = vunpack.c.h.bf16 %v259_v4  ;;  %v266_v21 = vunpack.c.l.bf16 %v260_v11  ;;  %s340_s24 = sld [smem:[#allocation3]] (!%p458_p7) }
  0x45   : > { %v276_v6 = vshrl.u32 %v275_v2, 7  ;;  %v262_v13 = vunpack.c.l.bf16 %v258_v3  ;;  %v263_v14 = vunpack.c.h.bf16 %v258_v3  ;;  %v267_v22 = vunpack.c.h.bf16 %v260_v11 }
  0x46   : > { %v268_v23 = vunpack.c.l.bf16 %v261_v12  ;;  %v269_v31 = vunpack.c.h.bf16 %v261_v12 }
  0x47   : > { %v277_v7 = vsub.s32 0, %v276_v6  ;;  %v281_v8 = vsub.s32 2, %v276_v6  ;;  %v285_v9 = vsub.s32 4, %v276_v6  ;;  %v289_v10 = vsub.s32 6, %v276_v6 }
  0x49   : > { %v278_v16 = vrot.slane %v271_v5, %v277_v7  ;;  %v282_v17 = vrot.slane %v271_v5, %v281_v8  ;;  %v286_v18 = vrot.slane %v271_v5, %v285_v9  ;;  %v290_v19 = vrot.slane %v271_v5, %v289_v10  ;;  %v272_v43 = vld [vmem:[#allocation2] sm:$0xff]  ;;  %v273_v46 = vld [vmem:[#allocation2 + $0x8] sm:$0xff] }
  0x4b   : > { %v298_v24 = vrot.slane %v278_v16, %v277_v7  ;;  %v302_v25 = vrot.slane %v282_v17, %v277_v7  ;;  %v306_v26 = vrot.slane %v286_v18, %v277_v7  ;;  %v310_v27 = vrot.slane %v290_v19, %v277_v7 }
  0x4d   : > { %v311_v28 = vmul.f32 %v298_v24, %v262_v13  ;;  %v312_v29 = vmul.f32 %v302_v25, %v263_v14  ;;  %v313_v30 = vmul.f32 %v306_v26, %v264_v15  ;;  %v315_v32 = vmul.f32 %v298_v24, %v266_v21 }
  0x4e   : > { %v316_v33 = vmul.f32 %v302_v25, %v267_v22  ;;  %v317_v34 = vmul.f32 %v306_v26, %v268_v23  ;;  %v314_v35 = vmul.f32 %v310_v27, %v265_v20  ;;  %v318_v39 = vmul.f32 %v310_v27, %v269_v31 }
  0x4f   : > { %v319_v36 = vadd.f32 %v312_v29, %v311_v28 }
  0x50   : > { %v324_v37 = vadd.f32 %v316_v33, %v315_v32 }
  0x51   : > { %v320_v38 = vadd.f32 %v319_v36, %v313_v30 }
  0x52   : > { %v325_v40 = vadd.f32 %v324_v37, %v317_v34 }
  0x53   : > { %v321_v41 = vadd.f32 %v320_v38, %v314_v35 }
  0x54   : > { %v326_v42 = vadd.f32 %v325_v40, %v318_v39 }
  0x55   : > { %322 = vadd.xlane.f32.xlu0 %v321_v41 }
  0x59   : > { %327 = vadd.xlane.f32.xlu0 %v326_v42 }
  0xde   : > { %v323_v44 = vpop.xlane.xlu0 %322 }
  0xdf   : > { %v329_v45 = vadd.f32 %v323_v44, %v272_v43 }
  0xe1   : > { %332 = vst.msk [vmem:[#allocation2] sm:$0xff] %vm331_vm1, %v329_v45  ;;  %337 = sbr.rel (%p458_p7) target bundleno = 240 (0xf0), region = 48 }
  0xe2   : > { %v328_v47 = vpop.xlane.xlu0 %327 }
  0xe3   : > { %v330_v48 = vadd.f32 %v328_v47, %v273_v46 }
  0xe5   : > { %333 = vst.msk [vmem:[#allocation2 + $0x8] sm:$0xff] %vm331_vm1, %v330_v48 }
  0xe6   : > { %v341_v51 = vstv %s340_s24 }
  0xe8   : > { %v338_v49 = vld [vmem:[#allocation2] sm:$0xff] }
  0xe9   : > { %v342_v52 = vadd.f32 %v341_v51, %v338_v49 }
  0xeb   : > { %344 = vst.msk [vmem:[%s806_s3] sm:$0xff] %vm331_vm1, %v342_v52 }
  0xec   : > { %v339_v50 = vld [vmem:[#allocation2 + $0x8] sm:$0xff] }
  0xed   : > { %v343_v53 = vadd.f32 %v341_v51, %v339_v50 }
  0xef   : > { %345 = vst.msk [vmem:[%s806_s3 + $0x8] sm:$0xff] %vm331_vm1, %v343_v53 }
  0xf0 PF: > { %s20_s19 = sadd.s32 1, %s639_s19   ;;  %s811_s14 = smov %s623_s15 }
  0xf1   : > { %p17_p11 = scmp.ge.s32.totalorder %s20_s19, 4   ;;  %s812_s15 = smov %s627_s16 }
  0xf2   : > { %s813_s16 = smov %s719_s25  ;;  %s814_s17 = smov %s635_s18 }
  0xf3   : > { %s815_s18 = smov %s817_s20  ;;  %19 = sbr.rel (!%p17_p11) target bundleno = 8 (0x8), region = 93 }
  0xf8   :  { %368 = vsyncpa [#allocation5], 1 }
  0xf9   :  { %370 = vsyncpa [#allocation5 + $0x1], 1 }
  0xfa   :  { %371 = vsyncpa [#allocation7], 1 }
  0xfb   :  { %373 = vsyncpa [#allocation7 + $0x1], 1 }

</bundles_post_ra>
